<compile_context>
chip_gen: v5e
topology: v5e:2x2
jax: 0.10.0
libtpu: 0.0.40
codegen_flags: <defaults>
</compile_context>

<pallas_src>
import functools

import jax
import jax.numpy as jnp
from jax import lax
from jax.experimental import pallas as pl
from jax.experimental.pallas import tpu as pltpu


def _round_up(n, m):
    return (n + m - 1) // m * m


def _softplus(s):
    # Stable softplus: max(s, 0) + log(1 + exp(-|s|)); exp/log go to the EUP.
    return jnp.maximum(s, 0.0) + jnp.log(1.0 + jnp.exp(-jnp.abs(s)))


def _contrastive_bpr_kernel(x_ref, pos_ref, neg_ref, o_ref, acc_ref, *,
                            n_valid, block_b):
    i = pl.program_id(0)

    @pl.when(i == 0)
    def _():
        acc_ref[...] = jnp.zeros_like(acc_ref)

    x = x_ref[...]                                                   # (tb, Dp)
    pos_s = jnp.sum(x * pos_ref[...], axis=-1, keepdims=True)        # (tb, 1)
    neg_s = jnp.sum(x * neg_ref[...], axis=-1, keepdims=True)        # (tb, 1)

    # BCE(sigmoid(s), 1) = softplus(-s); BCE(sigmoid(s), 0) = softplus(s).
    # PyTorch's BCELoss clamps each -log term at 100.
    pos_loss = jnp.minimum(_softplus(-pos_s), 100.0)
    neg_loss = jnp.minimum(_softplus(neg_s), 100.0)
    per_row = pos_loss + neg_loss                                    # (tb, 1)

    # Mask out padded batch rows, then accumulate the partial sum.
    rows = i * block_b + lax.broadcasted_iota(jnp.int32, per_row.shape, 0)
    per_row = jnp.where(rows < n_valid, per_row, 0.0)
    acc_ref[...] += jnp.sum(per_row, axis=0, keepdims=True)

    @pl.when(i == pl.num_programs(0) - 1)
    def _():
        o_ref[...] = acc_ref[...] * (1.0 / n_valid)


@jax.jit
def contrastive_bpr(x, pos, neg):
    """Fused Pallas implementation of Contrastive_BPR.forward(x, pos, neg)."""
    x = jnp.asarray(x, jnp.float32)
    pos = jnp.asarray(pos, jnp.float32)
    neg = jnp.asarray(neg, jnp.float32)

    # PyTorch semantics: reduce the last dim, mean over all remaining elements.
    if x.ndim == 1:
        x, pos, neg = x[None, :], pos[None, :], neg[None, :]
    elif x.ndim > 2:
        d = x.shape[-1]
        x, pos, neg = x.reshape(-1, d), pos.reshape(-1, d), neg.reshape(-1, d)

    b, d = x.shape
    dp = _round_up(d, 128)
    # Batch tile: multiple of 8, capped at 512 rows so 3 double-buffered input
    # tiles stay comfortably inside scoped VMEM even for wide feature dims.
    block_b = min(_round_up(b, 8), 512)
    bp = _round_up(b, block_b)
    n_blocks = bp // block_b

    pad = lambda a: jnp.pad(a, ((0, bp - b), (0, dp - d)))  # zero-pad: row sums unchanged

    # TODO(synk): feature dim is not tiled (fine for DLSP's D ~ 80); very wide
    # embeddings would additionally need a reduction grid axis over D.
    loss = pl.pallas_call(
        functools.partial(_contrastive_bpr_kernel, n_valid=b, block_b=block_b),
        grid_spec=pltpu.PrefetchScalarGridSpec(
            num_scalar_prefetch=0,
            grid=(n_blocks,),
            in_specs=[pl.BlockSpec((block_b, dp), lambda i: (i, 0))] * 3,
            out_specs=pl.BlockSpec((1, 1), lambda i: (0, 0)),
            scratch_shapes=[pltpu.VMEM((1, 1), jnp.float32)],
        ),
        out_shape=jax.ShapeDtypeStruct((1, 1), jnp.float32),
        compiler_params=pltpu.CompilerParams(
            dimension_semantics=("arbitrary",)),
    )(pad(x), pad(pos), pad(neg))
    return loss[0, 0]


def _reference(x, pos, neg):
    # Direct transcription of the PyTorch forward (no clamp needed at these scales).
    pos_score = jax.nn.sigmoid(jnp.sum(x * pos, axis=-1))
    neg_score = jax.nn.sigmoid(jnp.sum(x * neg, axis=-1))
    pos_loss = jnp.mean(-jnp.log(pos_score))
    neg_loss = jnp.mean(-jnp.log(1.0 - neg_score))
    return pos_loss + neg_loss


if __name__ == "__main__":
    key = jax.random.PRNGKey(0)
    kx, kp, kn = jax.random.split(key, 3)

    # Embedding-sized vectors as used in model_DLSP (E = 5 * f_embed_size = 80).
    B, D = 8, 80
    x = 0.2 * jax.random.normal(kx, (B, D), jnp.float32)
    pos = 0.2 * jax.random.normal(kp, (B, D), jnp.float32)
    neg = 0.2 * jax.random.normal(kn, (B, D), jnp.float32)

    # Batched case.
    loss = jax.block_until_ready(contrastive_bpr(x, pos, neg))
    ref = _reference(x, pos, neg)
    assert loss.shape == ()
    assert bool(jnp.isfinite(loss))
    assert bool(jnp.allclose(loss, ref, rtol=1e-5, atol=1e-5)), (loss, ref)

    # 1-D call pattern (how DLSP's SSL loss calls it: single embedding vectors).
    loss1 = jax.block_until_ready(contrastive_bpr(x[0], pos[0], neg[0]))
    ref1 = _reference(x[0], pos[0], neg[0])
    assert bool(jnp.allclose(loss1, ref1, rtol=1e-5, atol=1e-5)), (loss1, ref1)

    # Larger batch exercising the multi-step accumulation grid (non-multiple of tile).
    B2 = 1000
    kx2, kp2, kn2 = jax.random.split(jax.random.PRNGKey(1), 3)
    x2 = 0.2 * jax.random.normal(kx2, (B2, D), jnp.float32)
    pos2 = 0.2 * jax.random.normal(kp2, (B2, D), jnp.float32)
    neg2 = 0.2 * jax.random.normal(kn2, (B2, D), jnp.float32)
    loss2 = jax.block_until_ready(contrastive_bpr(x2, pos2, neg2))
    ref2 = _reference(x2, pos2, neg2)
    assert bool(jnp.allclose(loss2, ref2, rtol=1e-5, atol=1e-5)), (loss2, ref2)

    print("KERNEL_OK")
</pallas_src>

<mosaic_0001>
module attributes {stable_mosaic.version = 11 : i64} {
  func.func @_contrastive_bpr_kernel(%arg0: i32, %arg1: memref<8x128xf32, #tpu.memory_space<vmem>>, %arg2: memref<8x128xf32, #tpu.memory_space<vmem>>, %arg3: memref<8x128xf32, #tpu.memory_space<vmem>>, %arg4: memref<1x1xf32, #tpu.memory_space<vmem>>, %arg5: memref<1x1xf32, #tpu.memory_space<vmem>>) attributes {dimension_semantics = [#tpu.dimension_semantics<arbitrary>], iteration_bounds = array<i64: 1>, scalar_prefetch = 0 : i64, scratch_operands = 1 : i64, tpu.core_type = #tpu.core_type<tc>, window_params = [{transform_indices = @transform_0, window_bounds = array<i64: 8, 128>}, {transform_indices = @transform_1, window_bounds = array<i64: 8, 128>}, {transform_indices = @transform_2, window_bounds = array<i64: 8, 128>}, {pipeline_mode = #tpu.pipeline_mode<synchronous>, transform_indices = @transform_3, window_bounds = array<i64: 1, 1>}]} {
    %c0_i32 = arith.constant 0 : i32
    %0 = arith.cmpi eq, %arg0, %c0_i32 : i32
    %1 = arith.extui %0 : i1 to i32
    %c0_i32_0 = arith.constant 0 : i32
    %2 = arith.cmpi ne, %1, %c0_i32_0 : i32
    scf.if %2 {
      %cst_25 = arith.constant 0.000000e+00 : f32
      %55 = vector.broadcast %cst_25 : f32 to vector<1x1xf32>
      %c0_26 = arith.constant 0 : index
      %c0_27 = arith.constant 0 : index
      %56 = vector.load %arg5[%c0_26, %c0_27] : memref<1x1xf32, #tpu.memory_space<vmem>>, vector<1x1xf32>
      tpu.vector_store %arg5[%c0_26, %c0_27], %55 {strides = array<i32>} : memref<1x1xf32, #tpu.memory_space<vmem>>, vector<1x1xf32>,
    } else {
    }
    %c0 = arith.constant 0 : index
    %c0_1 = arith.constant 0 : index
    %3 = vector.load %arg1[%c0, %c0_1] : memref<8x128xf32, #tpu.memory_space<vmem>>, vector<8x128xf32>
    %c0_2 = arith.constant 0 : index
    %c0_3 = arith.constant 0 : index
    %4 = vector.load %arg2[%c0_2, %c0_3] : memref<8x128xf32, #tpu.memory_space<vmem>>, vector<8x128xf32>
    %5 = arith.mulf %3, %4 : vector<8x128xf32>
    %cst = arith.constant dense<0.000000e+00> : vector<8xf32>
    %6 = vector.multi_reduction <add>, %5, %cst [1] : vector<8x128xf32> to vector<8xf32>
    %7 = vector.shape_cast %6 : vector<8xf32> to vector<8x1xf32>
    %c0_4 = arith.constant 0 : index
    %c0_5 = arith.constant 0 : index
    %8 = vector.load %arg3[%c0_4, %c0_5] : memref<8x128xf32, #tpu.memory_space<vmem>>, vector<8x128xf32>
    %9 = arith.mulf %3, %8 : vector<8x128xf32>
    %cst_6 = arith.constant dense<0.000000e+00> : vector<8xf32>
    %10 = vector.multi_reduction <add>, %9, %cst_6 [1] : vector<8x128xf32> to vector<8xf32>
    %11 = vector.shape_cast %10 : vector<8xf32> to vector<8x1xf32>
    %cst_7 = arith.constant 0.000000e+00 : f32
    %12 = vector.broadcast %cst_7 : f32 to vector<8x1xf32>
    %13 = arith.subf %12, %7 : vector<8x1xf32>
    %cst_8 = arith.constant 0.000000e+00 : f32
    %14 = vector.broadcast %cst_8 : f32 to vector<8x1xf32>
    %15 = arith.maximumf %13, %14 : vector<8x1xf32>
    %16 = math.absf %13 : vector<8x1xf32>
    %cst_9 = arith.constant 0.000000e+00 : f32
    %17 = vector.broadcast %cst_9 : f32 to vector<8x1xf32>
    %18 = arith.subf %17, %16 : vector<8x1xf32>
    %19 = math.exp %18 : vector<8x1xf32>
    %cst_10 = arith.constant 1.000000e+00 : f32
    %20 = vector.broadcast %cst_10 : f32 to vector<8x1xf32>
    %21 = arith.addf %20, %19 : vector<8x1xf32>
    %22 = math.log %21 : vector<8x1xf32>
    %23 = arith.addf %15, %22 : vector<8x1xf32>
    %cst_11 = arith.constant 1.000000e+02 : f32
    %24 = vector.broadcast %cst_11 : f32 to vector<8x1xf32>
    %25 = arith.minimumf %23, %24 : vector<8x1xf32>
    %cst_12 = arith.constant 0.000000e+00 : f32
    %26 = vector.broadcast %cst_12 : f32 to vector<8x1xf32>
    %27 = arith.maximumf %11, %26 : vector<8x1xf32>
    %28 = math.absf %11 : vector<8x1xf32>
    %cst_13 = arith.constant 0.000000e+00 : f32
    %29 = vector.broadcast %cst_13 : f32 to vector<8x1xf32>
    %30 = arith.subf %29, %28 : vector<8x1xf32>
    %31 = math.exp %30 : vector<8x1xf32>
    %cst_14 = arith.constant 1.000000e+00 : f32
    %32 = vector.broadcast %cst_14 : f32 to vector<8x1xf32>
    %33 = arith.addf %32, %31 : vector<8x1xf32>
    %34 = math.log %33 : vector<8x1xf32>
    %35 = arith.addf %27, %34 : vector<8x1xf32>
    %cst_15 = arith.constant 1.000000e+02 : f32
    %36 = vector.broadcast %cst_15 : f32 to vector<8x1xf32>
    %37 = arith.minimumf %35, %36 : vector<8x1xf32>
    %38 = arith.addf %25, %37 : vector<8x1xf32>
    %c8_i32 = arith.constant 8 : i32
    %39 = arith.muli %arg0, %c8_i32 : i32
    %40 = tpu.iota {dimensions = array<i32: 0>} : vector<8x1xi32>
    %41 = vector.broadcast %39 : i32 to vector<8x1xi32>
    %42 = arith.addi %41, %40 : vector<8x1xi32>
    %c8_i32_16 = arith.constant 8 : i32
    %43 = vector.broadcast %c8_i32_16 : i32 to vector<8x1xi32>
    %44 = arith.cmpi slt, %42, %43 : vector<8x1xi32>
    %cst_17 = arith.constant 0.000000e+00 : f32
    %45 = vector.broadcast %cst_17 : f32 to vector<8x1xf32>
    %46 = arith.select %44, %38, %45 : vector<8x1xi1>, vector<8x1xf32>
    %c0_18 = arith.constant 0 : index
    %c0_19 = arith.constant 0 : index
    %47 = vector.load %arg5[%c0_18, %c0_19] : memref<1x1xf32, #tpu.memory_space<vmem>>, vector<1x1xf32>
    %cst_20 = arith.constant dense<0.000000e+00> : vector<1xf32>
    %48 = vector.multi_reduction <add>, %46, %cst_20 [0] : vector<8x1xf32> to vector<1xf32>
    %49 = vector.shape_cast %48 : vector<1xf32> to vector<1x1xf32>
    %50 = arith.addf %47, %49 : vector<1x1xf32>
    %c0_21 = arith.constant 0 : index
    %c0_22 = arith.constant 0 : index
    %51 = vector.load %arg5[%c0_21, %c0_22] : memref<1x1xf32, #tpu.memory_space<vmem>>, vector<1x1xf32>
    tpu.vector_store %arg5[%c0_21, %c0_22], %50 {strides = array<i32>} : memref<1x1xf32, #tpu.memory_space<vmem>>, vector<1x1xf32>,
    %c0_i32_23 = arith.constant 0 : i32
    %52 = arith.cmpi eq, %arg0, %c0_i32_23 : i32
    %53 = arith.extui %52 : i1 to i32
    %c0_i32_24 = arith.constant 0 : i32
    %54 = arith.cmpi ne, %53, %c0_i32_24 : i32
    scf.if %54 {
      %c0_25 = arith.constant 0 : index
      %c0_26 = arith.constant 0 : index
      %55 = vector.load %arg5[%c0_25, %c0_26] : memref<1x1xf32, #tpu.memory_space<vmem>>, vector<1x1xf32>
      %cst_27 = arith.constant 1.250000e-01 : f32
      %56 = vector.broadcast %cst_27 : f32 to vector<1x1xf32>
      %57 = arith.mulf %55, %56 : vector<1x1xf32>
      %c0_28 = arith.constant 0 : index
      %c0_29 = arith.constant 0 : index
      %58 = vector.load %arg4[%c0_28, %c0_29] : memref<1x1xf32, #tpu.memory_space<vmem>>, vector<1x1xf32>
      tpu.vector_store %arg4[%c0_28, %c0_29], %57 {strides = array<i32>} : memref<1x1xf32, #tpu.memory_space<vmem>>, vector<1x1xf32>,
    } else {
    }
    return
  }
  func.func @transform_0(%arg0: i32) -> (i32, i32) {
    %c0_i32 = arith.constant 0 : i32
    %c0_i32_0 = arith.constant 0 : i32
    return %arg0, %c0_i32 : i32, i32
  }
  func.func @transform_1(%arg0: i32) -> (i32, i32) {
    %c0_i32 = arith.constant 0 : i32
    %c0_i32_0 = arith.constant 0 : i32
    return %arg0, %c0_i32 : i32, i32
  }
  func.func @transform_2(%arg0: i32) -> (i32, i32) {
    %c0_i32 = arith.constant 0 : i32
    %c0_i32_0 = arith.constant 0 : i32
    return %arg0, %c0_i32 : i32, i32
  }
  func.func @transform_3(%arg0: i32) -> (i32, i32) {
    %c0_i32 = arith.constant 0 : i32
    %c0_i32_0 = arith.constant 0 : i32
    %c0_i32_1 = arith.constant 0 : i32
    return %c0_i32, %c0_i32_0 : i32, i32
  }
}

</mosaic_0001>

<bundles_post_ra>
// kernel: contrastive_bpr.1
= control target key start
LH: loop header
LB: loop body
LE: loop exit
PB: predicated region body
PF: predicated region fallthrough
CT: control target
= control target key end

     0   :  { %s164_s0 = inlined_call_operand.vmem [shape: f32[8,128], index: 0, kind: input, shape index: {}]   ;;  %s165_s1 = inlined_call_operand.vmem [shape: f32[8,128], index: 1, kind: input, shape index: {}]   ;;  %s166_s2 = inlined_call_operand.vmem [shape: f32[8,128], index: 2, kind: input, shape index: {}]   ;;  %s167_s3 = inlined_call_operand.hbm [shape: f32[1,1], index: 3, kind: output, shape index: {}]  }
   0x1   :  { %v21_v0 = vld [vmem:[%s164_s0] sm:$0xff] }
   0x2   :  { %v22_v1 = vld [vmem:[%s165_s1] sm:$0xff] }
   0x3   :  { %v23_v2 = vmul.f32 %v22_v1, %v21_v0 }
   0x4   :  { %8 = vsyncpa [#allocation4], 0  ;;  %v26_v3 = vld [vmem:[%s166_s2] sm:$0xff]  ;;  %vm19_vm0 = vcmask 0   ;;  %v127_v13 = vmov 0.0   ;;  %s128_s0 = smov [#allocation3]  }
   0x5   :  { %24 = vadd.xlane.f32.xlu0 %v23_v2  ;;  %v27_v4 = vmul.f32 %v26_v3, %v21_v0  ;;  %20 = vst.msk [vmem:[#allocation2] sm:$0x1] %vm19_vm0, %v127_v13  ;;  %s80_s1 = sshll.u32 %s128_s0, 4  ;;  %s82_s19 = sshll.u32 %s167_s3, 4  ;;  %s81_s1 = int_to_ptr.vmem [resolvable:$true] %s80_s1  ;;  %s83_s19 = int_to_ptr.hbm [resolvable:$true] %s82_s19 }
   0xc   :  { %v59_v35 = vld [vmem:[#allocation2] sm:$0x1] }
   0xd   :  { %28 = vadd.xlane.f32.xlu0 %v27_v4 }
  0x78   :  { %v25_v5 = vpop.xlane.xlu0 %24 }
  0x79   :  { %v30_v6 = vsub.f32 0.0, %v25_v5 }
  0x7b   :  { %v32_v7 = vand.u32 2147483647, %v30_v6  ;;  %v31_v21 = vmax.f32 %v30_v6, 0.0 }
  0x7d   :  { %v33_v8 = vsub.f32 0.0, %v32_v7 }
  0x7f   :  { %v34_v9 = vmul.f32 1.442695, %v33_v8 }
  0x80   :  { %v29_v10 = vpop.xlane.xlu0 %28 }
  0x81   :  { %93 = vpow2.f32 %v34_v9  ;;  %v42_v11 = vand.u32 2147483647, %v29_v10  ;;  %v41_v24 = vmax.f32 %v29_v10, 0.0 }
  0x83   :  { %v43_v12 = vsub.f32 0.0, %v42_v11 }
  0x85   :  { %v44_v14 = vmul.f32 1.442695, %v43_v12 }
  0x87   :  { %v94_v15 = vpop.eup %93  ;;  %95 = vpow2.f32 %v44_v14 }
  0x88   :  { %v36_v16 = vadd.f32 1.0, %v94_v15 }
  0x8a   :  { %97 = vlog2.f32 %v36_v16 }
  0x8d   :  { %v96_v17 = vpop.eup %95 }
  0x8e   :  { %v46_v18 = vadd.f32 1.0, %v96_v17 }
  0x90   :  { %v98_v19 = vpop.eup %97  ;;  %99 = vlog2.f32 %v46_v18 }
  0x91   :  { %v38_v20 = vmul.f32 0.6931472, %v98_v19 }
  0x93   :  { %v39_v23 = vadd.f32 %v38_v20, %v31_v21 }
  0x95   :  { %v40_v27 = vmin.f32 %v39_v23, 100.0 }
  0x96   :  { %v100_v22 = vpop.eup %99 }
  0x97   :  { %v48_v25 = vmul.f32 0.6931472, %v100_v22 }
  0x99   :  { %v49_v26 = vadd.f32 %v48_v25, %v41_v24 }
  0x9b   :  { %v50_v28 = vmin.f32 %v49_v26, 100.0 }
  0x9d   :  { %v51_v29 = vadd.f32 %v50_v28, %v40_v27 }
  0x9f   :  { %v60_v30 = vrot.slane %v51_v29, 4 }
  0xa1   :  { %v61_v31 = vadd.f32 %v60_v30, %v51_v29 }
  0xa3   :  { %v62_v32 = vrot.slane %v61_v31, 2 }
  0xa5   :  { %v63_v33 = vadd.f32 %v62_v32, %v61_v31 }
  0xa7   :  { %v64_v34 = vrot.slane %v63_v33, 1 }
  0xa9   :  { %v65_v36 = vadd.f32 %v64_v34, %v63_v33 }
  0xab   :  { %v66_v37 = vadd.f32 %v65_v36, %v59_v35 }
  0xad   :  { %68 = vst.msk [vmem:[#allocation2] sm:$0x1] %vm19_vm0, %v66_v37 }
  0xb4   :  { %v72_v38 = vld [vmem:[#allocation2] sm:$0x1] }
  0xb5   :  { %v73_v39 = vmul.f32 0.125, %v72_v38 }
  0xb7   :  { %74 = vst.msk [vmem:[#allocation3] sm:$0x1] %vm19_vm0, %v73_v39 }
  0xb8   :  { %85 = dma.vmem_to_hbm [thread:$0]  %s81_s1, 16, %s83_s19, [#allocation4]  }
  0xb9   :  { %125 = dma.done.wait [#allocation4], 16  }
  0xba   :  { %126 = vsyncadd [#allocation4], 4294967280 }
  0xbb   :  { %90 = vsyncpa [#allocation4], 1 }

</bundles_post_ra>
